<compile_context>
chip_gen: v5e
topology: v5e:2x2
jax: 0.10.0
libtpu: 0.0.40
codegen_flags: <defaults>
</compile_context>

<pallas_src>
import jax
import jax.numpy as jnp
from jax import lax
from jax.experimental import pallas as pl
from jax.experimental.pallas import tpu as pltpu


def _round_up(x, m):
    return ((x + m - 1) // m) * m


def _linear_kernel(x_ref, w_ref, b_ref, o_ref, acc_ref):
    # x_ref: (tm, tk) bf16   w_ref: (Lp, tk) bf16   b_ref: (1, Lp) f32
    # o_ref: (tm, Lp) f32    acc_ref: (tm, Lp) f32 VMEM scratch
    k = pl.program_id(1)

    @pl.when(k == 0)
    def _init():
        acc_ref[...] = jnp.zeros_like(acc_ref)

    # Contract on D of both operands -> no transpose / relayout of W.
    acc_ref[...] += lax.dot_general(
        x_ref[...],
        w_ref[...],
        dimension_numbers=(((1,), (1,)), ((), ())),
        preferred_element_type=jnp.float32,
    )

    @pl.when(k == pl.num_programs(1) - 1)
    def _finalize():
        # Bias added once, in the finalize step only.
        o_ref[...] = (acc_ref[...] + b_ref[...]).astype(o_ref.dtype)


def linear_classifier_forward(x, weight, bias, *, tm=256, tk=512,
                              compute_dtype=jnp.bfloat16):
    """x: (B, ...) -> flatten trailing dims; weight: (L, D); bias: (L,)."""
    B = x.shape[0]
    x2d = x.reshape(B, -1)
    D = x2d.shape[1]
    L = weight.shape[0]

    # Lane-dense output: pad num_labels up to a multiple of 128.
    Lp = max(128, _round_up(L, 128))

    # Tile sizes clamp to the (padded) problem so small shapes = 1 grid step.
    tm_eff = min(tm, _round_up(B, 8))
    tk_eff = min(tk, _round_up(D, 128))
    Bp = _round_up(B, tm_eff)
    Dp = _round_up(D, tk_eff)

    # bf16 MXU operands (f32 accumulation happens in the kernel).
    xp = jnp.pad(x2d.astype(compute_dtype), ((0, Bp - B), (0, Dp - D)))
    wp = jnp.pad(weight.astype(compute_dtype), ((0, Lp - L), (0, Dp - D)))
    bp = jnp.pad(bias.astype(jnp.float32).reshape(1, L), ((0, 0), (0, Lp - L)))

    grid = (Bp // tm_eff, Dp // tk_eff)

    out = pl.pallas_call(
        _linear_kernel,
        out_shape=jax.ShapeDtypeStruct((Bp, Lp), jnp.float32),
        grid_spec=pltpu.PrefetchScalarGridSpec(
            num_scalar_prefetch=0,
            grid=grid,
            in_specs=[
                pl.BlockSpec((tm_eff, tk_eff), lambda i, k: (i, k)),
                pl.BlockSpec((Lp, tk_eff), lambda i, k: (0, k)),
                pl.BlockSpec((1, Lp), lambda i, k: (0, 0)),
            ],
            out_specs=pl.BlockSpec((tm_eff, Lp), lambda i, k: (i, 0)),
            scratch_shapes=[pltpu.VMEM((tm_eff, Lp), jnp.float32)],
        ),
        compiler_params=pltpu.CompilerParams(
            dimension_semantics=("parallel", "arbitrary"),
            vmem_limit_bytes=32 * 1024 * 1024,
        ),
    )(xp, wp, bp)

    return out[:B, :L]


if __name__ == "__main__":
    key = jax.random.PRNGKey(0)
    k_x, k_w = jax.random.split(key)

    # Frozen-feature input with trailing dims to exercise x.view(B, -1):
    # (2, 4, 16, 16) -> flattened dim D = 1024 -> two K tiles of 512.
    B, C, H, W = 2, 4, 16, 16
    D = C * H * W
    num_labels = 2

    x = jax.random.normal(k_x, (B, C, H, W), dtype=jnp.float32)

    # nn.Linear(dim, num_labels) with weight ~ N(0, 0.01), bias = 0.
    weight = 0.01 * jax.random.normal(k_w, (num_labels, D), dtype=jnp.float32)
    bias = jnp.zeros((num_labels,), dtype=jnp.float32)

    out = linear_classifier_forward(x, weight, bias)
    out = jax.block_until_ready(out)

    # Reference in plain JAX (f32). Tolerance accounts for bf16 MXU operands.
    ref = x.reshape(B, -1) @ weight.T + bias
    assert out.shape == (B, num_labels)
    assert jnp.allclose(out, ref, atol=1e-2, rtol=1e-2)

    print("KERNEL_OK")
</pallas_src>

<mosaic_0001>
module attributes {stable_mosaic.version = 11 : i64} {
  func.func @_linear_kernel(%arg0: i32, %arg1: i32, %arg2: memref<8x512xbf16, #tpu.memory_space<vmem>>, %arg3: memref<128x512xbf16, #tpu.memory_space<vmem>>, %arg4: memref<1x128xf32, #tpu.memory_space<vmem>>, %arg5: memref<8x128xf32, #tpu.memory_space<vmem>>, %arg6: memref<8x128xf32, #tpu.memory_space<vmem>>) attributes {dimension_semantics = [#tpu.dimension_semantics<parallel>, #tpu.dimension_semantics<arbitrary>], iteration_bounds = array<i64: 1, 2>, scalar_prefetch = 0 : i64, scratch_operands = 1 : i64, tpu.core_type = #tpu.core_type<tc>, window_params = [{transform_indices = @transform_0, window_bounds = array<i64: 8, 512>}, {transform_indices = @transform_1, window_bounds = array<i64: 128, 512>}, {pipeline_mode = #tpu.pipeline_mode<synchronous>, transform_indices = @transform_2, window_bounds = array<i64: 1, 128>}, {transform_indices = @transform_3, window_bounds = array<i64: 8, 128>}]} {
    %c0_i32 = arith.constant 0 : i32
    %0 = arith.cmpi eq, %arg1, %c0_i32 : i32
    %1 = arith.extui %0 : i1 to i32
    %c0_i32_0 = arith.constant 0 : i32
    %2 = arith.cmpi ne, %1, %c0_i32_0 : i32
    scf.if %2 {
      %cst_9 = arith.constant 0.000000e+00 : f32
      %12 = vector.broadcast %cst_9 : f32 to vector<8x128xf32>
      %c0_10 = arith.constant 0 : index
      %c0_11 = arith.constant 0 : index
      %13 = vector.load %arg6[%c0_10, %c0_11] : memref<8x128xf32, #tpu.memory_space<vmem>>, vector<8x128xf32>
      tpu.vector_store %arg6[%c0_10, %c0_11], %12 {strides = array<i32>} : memref<8x128xf32, #tpu.memory_space<vmem>>, vector<8x128xf32>,
    } else {
    }
    %c0 = arith.constant 0 : index
    %c0_1 = arith.constant 0 : index
    %3 = vector.load %arg6[%c0, %c0_1] : memref<8x128xf32, #tpu.memory_space<vmem>>, vector<8x128xf32>
    %c0_2 = arith.constant 0 : index
    %c0_3 = arith.constant 0 : index
    %4 = vector.load %arg2[%c0_2, %c0_3] : memref<8x512xbf16, #tpu.memory_space<vmem>>, vector<8x512xbf16>
    %c0_4 = arith.constant 0 : index
    %c0_5 = arith.constant 0 : index
    %5 = vector.load %arg3[%c0_4, %c0_5] : memref<128x512xbf16, #tpu.memory_space<vmem>>, vector<128x512xbf16>
    %cst = arith.constant dense<0.000000e+00> : vector<8x128xf32>
    %6 = tpu.matmul %4, %5, %cst {dimension_numbers = #tpu.dot_dimension_numbers<[1], [1], [0], [0], [0, 0, 1, 0], [], []>} : vector<8x512xbf16>, vector<128x512xbf16>, vector<8x128xf32> -> vector<8x128xf32>
    %7 = arith.addf %3, %6 : vector<8x128xf32>
    %c0_6 = arith.constant 0 : index
    %c0_7 = arith.constant 0 : index
    %8 = vector.load %arg6[%c0_6, %c0_7] : memref<8x128xf32, #tpu.memory_space<vmem>>, vector<8x128xf32>
    tpu.vector_store %arg6[%c0_6, %c0_7], %7 {strides = array<i32>} : memref<8x128xf32, #tpu.memory_space<vmem>>, vector<8x128xf32>,
    %c1_i32 = arith.constant 1 : i32
    %9 = arith.cmpi eq, %arg1, %c1_i32 : i32
    %10 = arith.extui %9 : i1 to i32
    %c0_i32_8 = arith.constant 0 : i32
    %11 = arith.cmpi ne, %10, %c0_i32_8 : i32
    scf.if %11 {
      %c0_9 = arith.constant 0 : index
      %c0_10 = arith.constant 0 : index
      %12 = vector.load %arg6[%c0_9, %c0_10] : memref<8x128xf32, #tpu.memory_space<vmem>>, vector<8x128xf32>
      %c0_11 = arith.constant 0 : index
      %c0_12 = arith.constant 0 : index
      %13 = vector.load %arg4[%c0_11, %c0_12] : memref<1x128xf32, #tpu.memory_space<vmem>>, vector<1x128xf32>
      %14 = vector.broadcast %13 : vector<1x128xf32> to vector<8x128xf32>
      %15 = arith.addf %12, %14 : vector<8x128xf32>
      %c0_13 = arith.constant 0 : index
      %c0_14 = arith.constant 0 : index
      %16 = vector.load %arg5[%c0_13, %c0_14] : memref<8x128xf32, #tpu.memory_space<vmem>>, vector<8x128xf32>
      tpu.vector_store %arg5[%c0_13, %c0_14], %15 {strides = array<i32>} : memref<8x128xf32, #tpu.memory_space<vmem>>, vector<8x128xf32>,
    } else {
    }
    return
  }
  func.func @transform_0(%arg0: i32, %arg1: i32) -> (i32, i32) {
    %c0_i32 = arith.constant 0 : i32
    return %arg0, %arg1 : i32, i32
  }
  func.func @transform_1(%arg0: i32, %arg1: i32) -> (i32, i32) {
    %c0_i32 = arith.constant 0 : i32
    %c0_i32_0 = arith.constant 0 : i32
    return %c0_i32, %arg1 : i32, i32
  }
  func.func @transform_2(%arg0: i32, %arg1: i32) -> (i32, i32) {
    %c0_i32 = arith.constant 0 : i32
    %c0_i32_0 = arith.constant 0 : i32
    %c0_i32_1 = arith.constant 0 : i32
    return %c0_i32, %c0_i32_0 : i32, i32
  }
  func.func @transform_3(%arg0: i32, %arg1: i32) -> (i32, i32) {
    %c0_i32 = arith.constant 0 : i32
    %c0_i32_0 = arith.constant 0 : i32
    return %arg0, %c0_i32 : i32, i32
  }
}

</mosaic_0001>

<bundles_post_ra>
// kernel: tpu_custom_call.1
= control target key start
LH: loop header
LB: loop body
LE: loop exit
PB: predicated region body
PF: predicated region fallthrough
CT: control target
= control target key end

     0   :  { %8 = vsyncpa [#allocation4], 0  ;;  %s1230_s0 = inlined_call_operand.hbm [shape: bf16[8,1024], index: 0, kind: input, shape index: {}]   ;;  %s1231_s1 = inlined_call_operand.hbm [shape: bf16[128,1024], index: 1, kind: input, shape index: {}]   ;;  %s1232_s2 = inlined_call_operand.vmem [shape: f32[1,128], index: 2, kind: input, shape index: {}]   ;;  %s1233_s3 = inlined_call_operand.hbm [shape: f32[8,128], index: 3, kind: output, shape index: {}]  }
   0x1   :  { %10 = vsyncpa [#allocation4 + $0x1], 0 }
   0x2   :  { %11 = vsyncpa [#allocation7], 0 }
   0x3   :  { %13 = vsyncpa [#allocation7 + $0x1], 0 }
   0x4   :  { %14 = vsyncpa [#allocation5], 0  ;;  %s1044_s12 = smov 0   ;;  %s1046_s13 = smov 0  }
   0x5   :  { %s1048_s14 = smov 0   ;;  %s1050_s15 = smov 0  }
   0x6   :  { %s1052_s16 = smov 0   ;;  %s1054_s17 = smov 0  }
   0x7 LB: > { %s619_s18 = sadd.s32 4294967295, %s1017_s17   ;;  %s29_s19 = sadd.s32 1, %s1013_s16  ;;  %s1017_s17 = sphi %s1054_s17, %s20_s17   ;;  %s1013_s16 = sphi %s1052_s16, %s1241_s16   ;;  %s1009_s15 = sphi %s1050_s15, %s1240_s15   ;;  %s1005_s14 = sphi %s1048_s14, %s1239_s14   ;;  %s1001_s13 = sphi %s1046_s13, %s1238_s13   ;;  %s997_s12 = sphi %s1044_s12, %s1237_s12  }
   0x8   : > { %p30_p0 = scmp.ge.s32.totalorder %s29_s19, 2  ;;  %s41_s20 = sadd.s32 1, %s1005_s14 }
   0x9   : > { %p48_p1 = scmp.ne.s32.totalorder %s1005_s14, %s1001_s13  ;;  %p49_p2 = scmp.eq.s32.totalorder %s1017_s17, 0 }
   0xa   : > { %s1243_s19 = smov (%p30_p0, %s29_s19), 0  ;;  %p54_p4 = scmp.ne.s32.totalorder %s1001_s13, %s997_s12 }
   0xb   : > { %p1080_p3 = por %p49_p2, %p48_p1  ;;  %s37_s22 = ssub.s32 %s1013_s16, %s1243_s19 }
   0xc   : > { %p55_p5 = scmp.eq.s32.totalorder %s619_s18, 0  ;;  %p39_p6 = scmp.eq.s32.totalorder %s37_s22, 0 }
   0xd   : > { %p814_p8 = scmp.lt.s32.totalorder %s1017_s17, 2  ;;  %s1098_s25 = sand.u32 1, %s1005_s14  }
   0xe   : > { %p1089_p7 = por %p55_p5, %p54_p4  ;;  %s765_s26 = sshll.u32 %s1013_s16, 4 }
   0xf   : > { %s1095_s24 = scalar_select %p39_p6, %s1005_s14, %s41_s20  }
  0x10   : > { %s622_s27 = sshll.u32 %s1098_s25, 4  ;;  %s165_s30 = scalar_lea.hbm %s1230_s0, %s765_s26 }
  0x11   : > { %s167_s4 = sshll.u32 %s165_s30, 4  ;;  %s158_s5 = scalar_lea.vmem [#allocation3], %s622_s27  ;;  %s168_s4 = int_to_ptr.hbm [resolvable:$true] %s167_s4 }
  0x12   : > { %s169_s6 = sshll.u32 %s158_s5, 4  ;;  %p1107_p9 = pnand %p814_p8, %p1080_p3  ;;  %s170_s6 = int_to_ptr.vmem [resolvable:$true] %s169_s6 }
  0x13   : > { %s625_s8 = sshll.u32 %s1098_s25, 8  ;;  %s185_s11 = scalar_lea.hbm %s1231_s1, %s765_s26 }
  0x14   : > { %s155_s12 = scalar_lea.sflag [#allocation4], %s1098_s25  ;;  %s186_s20 = sshll.u32 %s185_s11, 4  ;;  %s187_s20 = int_to_ptr.hbm [resolvable:$true] %s186_s20 }
  0x15   : > { %810 = dma.hbm_to_vmem [thread:$0]  (!%p1107_p9), %s168_s4, 256, %s170_s6, %s155_s12  }
  0x16   : > { %p628_p10 = scmp.ge.s32.totalorder %s1017_s17, 1  ;;  %p196_p11 = scmp.lt.s32.totalorder %s1017_s17, 3 }
  0x17   : > { %s180_s22 = scalar_lea.vmem [#allocation6], %s625_s8  ;;  %s177_s27 = scalar_lea.sflag [#allocation7], %s1098_s25 }
  0x18   : > { %s188_s21 = sshll.u32 %s180_s22, 4  ;;  %p197_p12 = pnand %p628_p10, %p196_p11  ;;  %s189_s21 = int_to_ptr.vmem [resolvable:$true] %s188_s21 }
  0x19   : > { %s1019_s28 = smov 512   ;;  %s1020_s29 = smov 256  }
  0x1a   : > { %s1021_s30 = smov 16   ;;  %200 = sbr.rel (%p197_p12) target bundleno = 266 (0x10a), region = 32 }
  0x1b   : > { %813 = dma.hbm_to_vmem [thread:$0]  (!%p1107_p9), %s187_s20, 4096, %s189_s21, %s177_s27, %s1019_s28, %s1020_s29, %s1021_s30  }
  0x1c   : > { %s202_s26 = sand.u32 (!%p197_p12), 1, %s1001_s13  }
  0x1d   : > { %s629_s5 = sshll.u32 (!%p197_p12), %s202_s26, 4  ;;  %s203_s4 = scalar_lea.sflag (!%p197_p12), [#allocation4], %s202_s26 }
  0x1e   : > { %s1124_s6 = scalar_lea.vmem (!%p197_p12), [#allocation3], %s629_s5 }
  0x1f   : > { %984 = dma.done.wait (%p1089_p7), %s203_s4, 256  }
  0x20   : > { %986 = vsyncadd (%p1089_p7), %s203_s4, 4294967040  ;;  %s630_s25 = sshll.u32 %s202_s26, 8  ;;  %s213_s8 = scalar_lea.sflag [#allocation7], %s202_s26 }
  0x21   : > { %s1130_s9 = scalar_lea.vmem [#allocation6], %s630_s25 }
  0x22   : > { %988 = dma.done.wait (%p1089_p7), %s213_s8, 4096  }
  0x23   : > { %990 = vsyncadd (%p1089_p7), %s213_s8, 4294963200  ;;  %p631_p13 = scmp.ne.s32.totalorder %s1009_s15, 0 }
  0x25   : > { %245 = sbr.rel (%p631_p13) target bundleno = 44 (0x2c), region = 44 }
  0x2a   : > { %v1022_v0 = vmov 0.0  }
  0x2b   : > { %246 = vst [vmem:[#allocation2] sm:$0xff] %v1022_v0 }
  0x2c PF: > { %v746_v1 = vld [vmem:[%s1130_s9 + $0xe0] sm:$0xf]  ;;  %v797_v2 = vld [vmem:[%s1130_s9 + $0xec] sm:$0xf0]  ;;  %v795_v3 = vld [vmem:[%s1130_s9 + $0xe4] sm:$0xf] }
  0x2d   : > { %v747_v4 = vor.u32 %v797_v2, %v746_v1  ;;  %v748_v5 = vld [vmem:[%s1130_s9 + $0xf0] sm:$0xf0]  ;;  %v754_v6 = vld [vmem:[%s1130_s9 + $0xe8] sm:$0xf]  ;;  %v798_v7 = vld [vmem:[%s1130_s9 + $0xf4] sm:$0xf0] }
  0x2e   : > { %v751_v8 = vor.u32 %v795_v3, %v748_v5  ;;  %v755_v9 = vor.u32 %v798_v7, %v754_v6  ;;  %v796_v10 = vld [vmem:[%s1130_s9 + $0xec] sm:$0xf]  ;;  %v756_v11 = vld [vmem:[%s1130_s9 + $0xf8] sm:$0xf0]  ;;  %v730_v13 = vld [vmem:[%s1130_s9 + $0xc0] sm:$0xf] }
  0x2f   : > { %456 = vmatpush.bf16.xpose.msra.mxu0 %v747_v4  ;;  %v759_v12 = vor.u32 %v796_v10, %v756_v11  ;;  %v793_v14 = vld [vmem:[%s1130_s9 + $0xcc] sm:$0xf0]  ;;  %v791_v15 = vld [vmem:[%s1130_s9 + $0xc4] sm:$0xf]  ;;  %v732_v16 = vld [vmem:[%s1130_s9 + $0xd0] sm:$0xf0] }
  0x30   : > { %469 = vmatpush.bf16.xpose.msra.mxu1 %v751_v8  ;;  %482 = vmatpush.bf16.xpose.msra.mxu2 %v755_v9  ;;  %v738_v17 = vld [vmem:[%s1130_s9 + $0xc8] sm:$0xf]  ;;  %v794_v18 = vld [vmem:[%s1130_s9 + $0xd4] sm:$0xf0]  ;;  %v792_v19 = vld [vmem:[%s1130_s9 + $0xcc] sm:$0xf]  ;;  %v731_v21 = vor.u32 %v793_v14, %v730_v13  ;;  %v735_v22 = vor.u32 %v791_v15, %v732_v16 }
  0x31   : > { %495 = vmatpush.bf16.xpose.msra.mxu3 %v759_v12  ;;  %v740_v20 = vld [vmem:[%s1130_s9 + $0xd8] sm:$0xf0]  ;;  %v739_v23 = vor.u32 %v794_v18, %v738_v17  ;;  %v714_v25 = vld [vmem:[%s1130_s9 + $0xa0] sm:$0xf]  ;;  %v789_v26 = vld [vmem:[%s1130_s9 + $0xac] sm:$0xf0] }
  0x32   : > { %v743_v24 = vor.u32 %v792_v19, %v740_v20  ;;  %v787_v27 = vld [vmem:[%s1130_s9 + $0xa4] sm:$0xf]  ;;  %v716_v28 = vld [vmem:[%s1130_s9 + $0xb0] sm:$0xf0]  ;;  %v722_v29 = vld [vmem:[%s1130_s9 + $0xa8] sm:$0xf]  ;;  %v715_v33 = vor.u32 %v789_v26, %v714_v25 }
  0x33   : > { %v790_v30 = vld [vmem:[%s1130_s9 + $0xb4] sm:$0xf0]  ;;  %v788_v31 = vld [vmem:[%s1130_s9 + $0xac] sm:$0xf]  ;;  %v724_v32 = vld [vmem:[%s1130_s9 + $0xb8] sm:$0xf0]  ;;  %v719_v34 = vor.u32 %v787_v27, %v716_v28 }
  0x34   : > { %v723_v35 = vor.u32 %v790_v30, %v722_v29  ;;  %v727_v36 = vor.u32 %v788_v31, %v724_v32  ;;  %v698_v37 = vld [vmem:[%s1130_s9 + $0x80] sm:$0xf]  ;;  %v785_v38 = vld [vmem:[%s1130_s9 + $0x8c] sm:$0xf0]  ;;  %v783_v39 = vld [vmem:[%s1130_s9 + $0x84] sm:$0xf] }
  0x35   : > { %v700_v40 = vld [vmem:[%s1130_s9 + $0x90] sm:$0xf0]  ;;  %v706_v41 = vld [vmem:[%s1130_s9 + $0x88] sm:$0xf]  ;;  %v786_v42 = vld [vmem:[%s1130_s9 + $0x94] sm:$0xf0]  ;;  %v699_v45 = vor.u32 %v785_v38, %v698_v37 }
  0x36   : > { %v784_v43 = vld [vmem:[%s1130_s9 + $0x8c] sm:$0xf]  ;;  %v708_v44 = vld [vmem:[%s1130_s9 + $0x98] sm:$0xf0]  ;;  %v703_v46 = vor.u32 %v783_v39, %v700_v40  ;;  %v707_v47 = vor.u32 %v786_v42, %v706_v41  ;;  %v682_v49 = vld [vmem:[%s1130_s9 + $0x60] sm:$0xf] }
  0x37   : > { %457 = vmatpush.bf16.xpose.msra.mxu0 %v731_v21  ;;  %v711_v48 = vor.u32 %v784_v43, %v708_v44  ;;  %v781_v50 = vld [vmem:[%s1130_s9 + $0x6c] sm:$0xf0]  ;;  %v779_v51 = vld [vmem:[%s1130_s9 + $0x64] sm:$0xf]  ;;  %v684_v52 = vld [vmem:[%s1130_s9 + $0x70] sm:$0xf0] }
  0x38   : > { %470 = vmatpush.bf16.xpose.msra.mxu1 %v735_v22  ;;  %483 = vmatpush.bf16.xpose.msra.mxu2 %v739_v23  ;;  %v690_v53 = vld [vmem:[%s1130_s9 + $0x68] sm:$0xf]  ;;  %v782_v54 = vld [vmem:[%s1130_s9 + $0x74] sm:$0xf0]  ;;  %v780_v55 = vld [vmem:[%s1130_s9 + $0x6c] sm:$0xf]  ;;  %v683_v57 = vor.u32 %v781_v50, %v682_v49  ;;  %v687_v58 = vor.u32 %v779_v51, %v684_v52 }
  0x39   : > { %496 = vmatpush.bf16.xpose.msra.mxu3 %v743_v24  ;;  %v692_v56 = vld [vmem:[%s1130_s9 + $0x78] sm:$0xf0]  ;;  %v691_v59 = vor.u32 %v782_v54, %v690_v53  ;;  %v666_v61 = vld [vmem:[%s1130_s9 + $0x40] sm:$0xf]  ;;  %v777_v62 = vld [vmem:[%s1130_s9 + $0x4c] sm:$0xf0] }
  0x3a   : > { %v695_v60 = vor.u32 %v780_v55, %v692_v56  ;;  %v775_v63 = vld [vmem:[%s1130_s9 + $0x44] sm:$0xf]  ;;  %v668_v0 = vld [vmem:[%s1130_s9 + $0x50] sm:$0xf0]  ;;  %v674_v1 = vld [vmem:[%s1130_s9 + $0x48] sm:$0xf]  ;;  %v667_v5 = vor.u32 %v777_v62, %v666_v61 }
  0x3b   : > { %v778_v2 = vld [vmem:[%s1130_s9 + $0x54] sm:$0xf0]  ;;  %v776_v3 = vld [vmem:[%s1130_s9 + $0x4c] sm:$0xf]  ;;  %v676_v4 = vld [vmem:[%s1130_s9 + $0x58] sm:$0xf0]  ;;  %v671_v6 = vor.u32 %v775_v63, %v668_v0 }
  0x3c   : > { %v675_v7 = vor.u32 %v778_v2, %v674_v1  ;;  %v679_v8 = vor.u32 %v776_v3, %v676_v4  ;;  %v650_v9 = vld [vmem:[%s1130_s9 + $0x20] sm:$0xf]  ;;  %v773_v10 = vld [vmem:[%s1130_s9 + $0x2c] sm:$0xf0]  ;;  %v771_v11 = vld [vmem:[%s1130_s9 + $0x24] sm:$0xf] }
  0x3d   : > { %v652_v12 = vld [vmem:[%s1130_s9 + $0x30] sm:$0xf0]  ;;  %v658_v13 = vld [vmem:[%s1130_s9 + $0x28] sm:$0xf]  ;;  %v774_v14 = vld [vmem:[%s1130_s9 + $0x34] sm:$0xf0]  ;;  %v651_v17 = vor.u32 %v773_v10, %v650_v9 }
  0x3e   : > { %v772_v15 = vld [vmem:[%s1130_s9 + $0x2c] sm:$0xf]  ;;  %v660_v16 = vld [vmem:[%s1130_s9 + $0x38] sm:$0xf0]  ;;  %v655_v18 = vor.u32 %v771_v11, %v652_v12  ;;  %v659_v19 = vor.u32 %v774_v14, %v658_v13  ;;  %v634_v21 = vld [vmem:[%s1130_s9] sm:$0xf] }
  0x3f   : > { %458 = vmatpush.bf16.xpose.msra.mxu0 %v715_v33  ;;  %v663_v20 = vor.u32 %v772_v15, %v660_v16  ;;  %v769_v22 = vld [vmem:[%s1130_s9 + $0xc] sm:$0xf0]  ;;  %v767_v23 = vld [vmem:[%s1130_s9 + $0x4] sm:$0xf]  ;;  %v636_v24 = vld [vmem:[%s1130_s9 + $0x10] sm:$0xf0] }
  0x40   : > { %471 = vmatpush.bf16.xpose.msra.mxu1 %v719_v34  ;;  %484 = vmatpush.bf16.xpose.msra.mxu2 %v723_v35  ;;  %v642_v25 = vld [vmem:[%s1130_s9 + $0x8] sm:$0xf]  ;;  %v770_v26 = vld [vmem:[%s1130_s9 + $0x14] sm:$0xf0]  ;;  %v768_v27 = vld [vmem:[%s1130_s9 + $0xc] sm:$0xf]  ;;  %v635_v29 = vor.u32 %v769_v22, %v634_v21  ;;  %v639_v31 = vor.u32 %v767_v23, %v636_v24 }
  0x41   : > { %497 = vmatpush.bf16.xpose.msra.mxu3 %v727_v36  ;;  %v644_v28 = vld [vmem:[%s1130_s9 + $0x18] sm:$0xf0]  ;;  %v248_v30 = vld [vmem:[%s1124_s6] sm:$0xff]  ;;  %v643_v32 = vor.u32 %v770_v26, %v642_v25  ;;  %p760_p0 = scmp.ne.s32.totalorder %s1009_s15, 1 }
  0x42   : > { %v249_v33 = vld [vmem:[%s1124_s6 + $0x8] sm:$0xff]  ;;  %v647_v34 = vor.u32 %v768_v27, %v644_v28  ;;  %v284_v35 = vunpack.c.l.b16 %v248_v30  ;;  %v285_v36 = vunpack.c.h.b16 %v248_v30 }
  0x43   : > { %v286_v37 = vunpack.c.l.b16 %v249_v33  ;;  %v287_v38 = vunpack.c.h.b16 %v249_v33  ;;  %v247_v50 = vld [vmem:[#allocation2] sm:$0xff] }
  0x44   : > { %v288_v39 = vpack.c.b16 %v284_v35, %v284_v35  ;;  %v289_v40 = vpack.c.b16 %v285_v36, %v285_v36 }
  0x45   : > { %v290_v41 = vpack.c.b16 %v286_v37, %v286_v37  ;;  %v291_v42 = vpack.c.b16 %v287_v38, %v287_v38 }
  0x47   : > { %459 = vmatpush.bf16.xpose.msra.mxu0 %v699_v45 }
  0x48   : > { %472 = vmatpush.bf16.xpose.msra.mxu1 %v703_v46  ;;  %485 = vmatpush.bf16.xpose.msra.mxu2 %v707_v47 }
  0x49   : > { %498 = vmatpush.bf16.xpose.msra.mxu3 %v711_v48 }
  0x4f   : > { %460 = vmatpush.bf16.xpose.msra.mxu0 %v683_v57 }
  0x50   : > { %473 = vmatpush.bf16.xpose.msra.mxu1 %v687_v58  ;;  %486 = vmatpush.bf16.xpose.msra.mxu2 %v691_v59 }
  0x51   : > { %499 = vmatpush.bf16.xpose.msra.mxu3 %v695_v60 }
  0x57   : > { %461 = vmatpush.bf16.xpose.msra.mxu0 %v667_v5 }
  0x58   : > { %474 = vmatpush.bf16.xpose.msra.mxu1 %v671_v6  ;;  %487 = vmatpush.bf16.xpose.msra.mxu2 %v675_v7 }
  0x59   : > { %500 = vmatpush.bf16.xpose.msra.mxu3 %v679_v8 }
  0x5f   : > { %462 = vmatpush.bf16.xpose.msra.mxu0 %v651_v17 }
  0x60   : > { %475 = vmatpush.bf16.xpose.msra.mxu1 %v655_v18  ;;  %488 = vmatpush.bf16.xpose.msra.mxu2 %v659_v19 }
  0x61   : > { %501 = vmatpush.bf16.xpose.msra.mxu3 %v663_v20 }
  0x67   : > { %463 = vmatpush.bf16.xpose.msra.mxu0 %v635_v29 }
  0x68   : > { %476 = vmatpush.bf16.xpose.msra.mxu1 %v639_v31  ;;  %489 = vmatpush.bf16.xpose.msra.mxu2 %v643_v32 }
  0x69   : > { %502 = vmatpush.bf16.xpose.msra.mxu3 %v647_v34 }
  0x6e   : > { %464 = vmatmul.bf16.vlgmr.msra.gmra.mxu0 %v288_v39 }
  0x6f   : > { %477 = vmatmul.bf16.vlgmr.msra.gmra.mxu1 %v289_v40  ;;  %490 = vmatmul.bf16.vlgmr.msra.gmra.mxu2 %v290_v41 }
  0x70   : > { %503 = vmatmul.bf16.vlgmr.msra.gmra.mxu3 %v291_v42 }
  0xeb   : > { %v465_v43 = vpop.f32.mrf.mxu0 }
  0xec   : > { %v478_v44 = vpop.f32.mrf.mxu1 }
  0xed   : > { %v479_v45 = vadd.f32 %v478_v44, %v465_v43 }
  0xf2   : > { %v491_v46 = vpop.f32.mrf.mxu2 }
  0xf3   : > { %v492_v47 = vadd.f32 %v491_v46, %v479_v45  ;;  %v504_v48 = vpop.f32.mrf.mxu3  ;;  %v467_v49 = vpop.f32.mrf.mxu0 }
  0xf4   : > { %v480_v51 = vpop.f32.mrf.mxu1 }
  0xf5   : > { %v505_v52 = vadd.f32 %v504_v48, %v492_v47 }
  0xf7   : > { %v508_v53 = vadd.f32 %v505_v52, %v247_v50  ;;  %513 = sbr.rel (%p760_p0) target bundleno = 260 (0x104), region = 48 }
  0xf9   : > { %509 = vst [vmem:[#allocation2] sm:$0xff] %v508_v53 }
  0xfa   : > { %v493_v54 = vpop.f32.mrf.mxu2 }
  0xfb   : > { %v506_v55 = vpop.f32.mrf.mxu3 }
  0xfc   : > { %v870_v57 = vld [vmem:[%s1232_s2] ss:$0 sm:$0xff] }
 0x100   : > { %v514_v56 = vld [vmem:[#allocation2] sm:$0xff] }
 0x101   : > { %v519_v58 = vadd.f32 %v870_v57, %v514_v56 }
 0x103   : > { %520 = vst [vmem:[#allocation8] sm:$0xff] %v519_v58 }
 0x104 PF: > { %p815_p1 = scmp.eq.s32.totalorder %s619_s18, 1  ;;  %s531_s12 = sshll.u32 %s1233_s3, 4  ;;  %s532_s12 = int_to_ptr.hbm [resolvable:$true] %s531_s12 }
 0x105   : > { %s1023_s20 = smov [#allocation8]  }
 0x106   : > { %s529_s22 = sshll.u32 %s1023_s20, 4  ;;  %s530_s22 = int_to_ptr.vmem [resolvable:$true] %s529_s22 }
 0x107   : > { %804 = dma.vmem_to_hbm [thread:$0]  (%p815_p1), %s530_s22, 128, %s532_s12, [#allocation5]  }
 0x108   : > { %992 = dma.done.wait (%p815_p1), [#allocation5], 128  }
 0x109   : > { %994 = vsyncadd (%p815_p1), [#allocation5], 4294967168 }
 0x10a PF: > { %s20_s17 = sadd.s32 1, %s1017_s17   ;;  %s1237_s12 = smov %s1001_s13 }
 0x10b   : > { %p17_p2 = scmp.ge.s32.totalorder %s20_s17, 4   ;;  %s1238_s13 = smov %s1005_s14 }
 0x10c   : > { %s1239_s14 = smov %s1095_s24  ;;  %s1240_s15 = smov %s1013_s16 }
 0x10d   : > { %s1241_s16 = smov %s1243_s19  ;;  %19 = sbr.rel (!%p17_p2) target bundleno = 7 (0x7), region = 91 }
 0x112   :  { %545 = vsyncpa [#allocation4], 1 }
 0x113   :  { %547 = vsyncpa [#allocation4 + $0x1], 1 }
 0x114   :  { %548 = vsyncpa [#allocation7], 1 }
 0x115   :  { %550 = vsyncpa [#allocation7 + $0x1], 1 }
 0x116   :  { %551 = vsyncpa [#allocation5], 1 }
 0x117   :  { %553 = vsyncpa [#allocation5 + $0x1], 1 }

</bundles_post_ra>
